<compile_context>
chip_gen: v7x
topology: tpu7x:2x2x1
jax: 0.10.0
libtpu: 0.0.40
codegen_flags: <defaults>
</compile_context>

<pallas_src>
import functools
import math

import jax
import jax.numpy as jnp
from jax import lax
from jax.experimental import pallas as pl
from jax.experimental.pallas import tpu as pltpu

_LANE = 128          # TPU lane width; pad feature dim to a multiple of this
_ALPHA = 0.001       # smooth_leaky_relu alpha from the PyTorch module
FC_DIM = 64          # fc_dim in the PyTorch module
ENDTIME = 1.0        # endtime in the PyTorch module

_TILE_CANDIDATES = (4096, 2048, 1024, 512, 256)   # batch-tile sizes (rows)


def _round_up(n, m):
    return ((n + m - 1) // m) * m


def _stable_softplus(h):
    # log(1 + exp(h)) without overflow: max(h,0) + log1p(exp(-|h|)).
    return jnp.maximum(h, 0.0) + jnp.log1p(jnp.exp(-jnp.abs(h)))


def _smooth_leaky_relu(h, alpha):
    return alpha * h + (1.0 - alpha) * _stable_softplus(h)


def _odeblock_kernel(x_ref, w_ref, b_ref, o_ref, *, num_steps, dt, alpha):
    """Fused fixed-step Euler integration of y' = slr(y @ W + b).

    x_ref: (TB, Dp)   current batch tile (feature-padded, f32)
    w_ref: (Dp, Dp)   VMEM-resident weight (padded, bf16, y = x @ W + b conv.)
    b_ref: (1, Dp)    VMEM-resident bias (f32)
    o_ref: (TB, Dp)   lane-dense output tile (f32)
    """
    w = w_ref[...]
    y0 = x_ref[...].astype(jnp.float32)
    # Hoisted: broadcast bias once (JAX does not CSE broadcast_in_dim).
    b_full = jnp.broadcast_to(b_ref[...], y0.shape).astype(jnp.float32)

    def euler_step(_, y):
        # bf16 MXU matmul, f32 accumulation; Euler state stays f32.
        h = jnp.dot(y.astype(w.dtype), w,
                    preferred_element_type=jnp.float32) + b_full
        return y + dt * _smooth_leaky_relu(h, alpha)

    if num_steps == 1:
        # Spec path (torchdiffeq euler on t=[0,1] with no step_size): one step.
        y = euler_step(0, y0)
    else:
        # Rolled loop: steps are serially dependent, so unrolling buys no ILP.
        # TODO(synk): for tiny TB + large num_steps on v6e, drive the MXU
        # explicitly (matmul_push_rhs once, matmul_acc_lhs per step) to avoid
        # re-pushing the 128-row weight every step.
        y = lax.fori_loop(0, num_steps, euler_step, y0)

    o_ref[...] = y.astype(o_ref.dtype)


def _pick_batch_tile(batch):
    """Fixed batch tile; the wrapper pads B up to a multiple of it."""
    if batch <= 512:
        # Single tile, rounded up to the 8-sublane minimum. (At B=8 the call
        # is pure launch latency; nothing to shard across TCs anyway.)
        return _round_up(max(batch, 8), 8)
    # Largest candidate that (a) leaves >= 2 tiles so v7x can shard the grid
    # across both TensorCores and (b) wastes <= ~12.5% zero-padded rows.
    for tb in _TILE_CANDIDATES:
        if 2 * tb <= batch and ((-batch) % tb) * 8 <= batch:
            return tb
    return 256


def prepare_odeblock_params(weight, bias, *, matmul_dtype=jnp.bfloat16):
    """Pad params to the 128-lane layout ONCE (they are constant across calls).

    weight: (D, D) f32, y = x @ W + b convention (i.e. torch weight.T)
    bias:   (D,)   f32
    Returns (w_p, b_p): ((Dp, Dp) matmul_dtype, (1, Dp) f32), Dp = round_up(D, 128).
    Padded rows/cols of W are zero, so padded lanes never contaminate real ones.
    """
    D = weight.shape[0]
    assert weight.shape == (D, D) and bias.shape == (D,)
    Dp = _round_up(D, _LANE)
    pad = Dp - D
    w_p = jnp.pad(weight, ((0, pad), (0, pad))).astype(matmul_dtype)
    b_p = jnp.pad(bias.reshape(1, D), ((0, 0), (0, pad))).astype(jnp.float32)
    return w_p, b_p


def odeblock_forward(x, w_p, b_p, *, num_steps=1, endtime=ENDTIME, alpha=_ALPHA):
    """ODEBlock forward: fixed-step Euler of y' = slr(y @ W + b), y(0) = x.

    x:   (B, D)    f32
    w_p: (Dp, Dp)  pre-padded weight from prepare_odeblock_params
    b_p: (1, Dp)   pre-padded bias   from prepare_odeblock_params
    Returns y(endtime) with shape (B, D), f32.
    """
    B, D = x.shape
    Dp = w_p.shape[0]
    assert w_p.shape == (Dp, Dp) and b_p.shape == (1, Dp) and Dp >= D
    assert num_steps >= 1
    dt = float(endtime) / float(num_steps)

    # Batch tiling: pad B up to a multiple of a fixed tile (never one huge
    # block), then lane-pad the feature axis. Padded rows are zeros and are
    # sliced off; the pad fuses into the pallas_call via allow_input_fusion.
    TB = _pick_batch_tile(B)
    Bp = _round_up(B, TB)
    x_p = jnp.pad(x, ((0, Bp - B), (0, Dp - D)))
    grid = (Bp // TB,)

    kernel = functools.partial(
        _odeblock_kernel, num_steps=num_steps, dt=dt, alpha=alpha)

    out_p = pl.pallas_call(
        kernel,
        out_shape=jax.ShapeDtypeStruct((Bp, Dp), x.dtype),
        grid_spec=pl.GridSpec(
            grid=grid,
            in_specs=[
                pl.BlockSpec((TB, Dp), lambda i: (i, 0)),   # x tile
                pl.BlockSpec((Dp, Dp), lambda i: (0, 0)),   # weight (resident)
                pl.BlockSpec((1, Dp), lambda i: (0, 0)),    # bias   (resident)
            ],
            out_specs=pl.BlockSpec((TB, Dp), lambda i: (i, 0)),
        ),
        compiler_params=pltpu.CompilerParams(
            dimension_semantics=("parallel",),       # shard batch tiles / TCs
            allow_input_fusion=[True, True, True],   # fuse the x pad producer
        ),
        cost_estimate=pl.CostEstimate(
            flops=num_steps * (2 * Bp * Dp * Dp + 6 * Bp * Dp),
            transcendentals=num_steps * 2 * Bp * Dp,        # exp + log1p
            bytes_accessed=2 * Bp * Dp * 4 + Dp * Dp * 2 + Dp * 4,
        ),
    )(x_p, w_p, b_p)

    return out_p[:B, :D]


def make_odefunc_params(key, dim):
    """nn.Linear(dim, dim)-style init; weight stored as (in, out) = torch W.T."""
    kw, kb = jax.random.split(key)
    bound = 1.0 / math.sqrt(dim)
    weight = jax.random.uniform(kw, (dim, dim), minval=-bound, maxval=bound,
                                dtype=jnp.float32)
    bias = jax.random.uniform(kb, (dim,), minval=-bound, maxval=bound,
                              dtype=jnp.float32)
    return weight, bias


if __name__ == "__main__":
    key = jax.random.PRNGKey(0)
    kx, kp = jax.random.split(key)

    batch = 8
    x = jax.random.normal(kx, (batch, FC_DIM), dtype=jnp.float32)
    weight, bias = make_odefunc_params(kp, FC_DIM)

    # Pad/cast the constant parameters exactly once.
    w_p, b_p = prepare_odeblock_params(weight, bias)

    fwd = jax.jit(odeblock_forward)   # x pad / kernel / slice fuse under jit
    y = jax.block_until_ready(fwd(x, w_p, b_p))
    assert y.shape == (batch, FC_DIM)
    assert bool(jnp.all(jnp.isfinite(y)))

    # Pure-JAX references of ODEBlock: one Euler step of the ODE function.
    # (a) exact f32 reference (torch semantics) -> bf16-matmul tolerance.
    h_f32 = x @ weight + bias
    y_ref_f32 = x + ENDTIME * _smooth_leaky_relu(h_f32, _ALPHA)
    assert jnp.allclose(y, y_ref_f32, atol=3e-2, rtol=3e-2), (
        float(jnp.max(jnp.abs(y - y_ref_f32))))

    # (b) reference using the same bf16 matmul / f32 accumulation -> tight.
    h_bf = jnp.dot(x.astype(jnp.bfloat16), weight.astype(jnp.bfloat16),
                   preferred_element_type=jnp.float32) + bias
    y_ref_bf = x + ENDTIME * _smooth_leaky_relu(h_bf, _ALPHA)
    assert jnp.allclose(y, y_ref_bf, atol=1e-3, rtol=1e-3), (
        float(jnp.max(jnp.abs(y - y_ref_bf))))

    # TODO(synk): adaptive-step odeint (rtol/atol-driven) is not implemented;
    # the spec's method='euler' with t=[0,1] is fixed-step and reproduced exactly.
    print("KERNEL_OK")
</pallas_src>

<mosaic_0001>
module attributes {stable_mosaic.version = 11 : i64} {
  func.func @_odeblock_kernel(%arg0: i32, %arg1: memref<8x128xf32, #tpu.memory_space<vmem>>, %arg2: memref<128x128xbf16, #tpu.memory_space<vmem>>, %arg3: memref<1x128xf32, #tpu.memory_space<vmem>>, %arg4: memref<8x128xf32, #tpu.memory_space<vmem>>) attributes {dimension_semantics = [#tpu.dimension_semantics<parallel>], iteration_bounds = array<i64: 1>, scalar_prefetch = 0 : i64, scratch_operands = 0 : i64, tpu.core_type = #tpu.core_type<tc>, window_params = [{transform_indices = @transform_0, window_bounds = array<i64: 8, 128>}, {pipeline_mode = #tpu.pipeline_mode<synchronous>, transform_indices = @transform_1, window_bounds = array<i64: 128, 128>}, {pipeline_mode = #tpu.pipeline_mode<synchronous>, transform_indices = @transform_2, window_bounds = array<i64: 1, 128>}, {transform_indices = @transform_3, window_bounds = array<i64: 8, 128>}]} {
    %c0 = arith.constant 0 : index
    %c0_0 = arith.constant 0 : index
    %0 = vector.load %arg2[%c0, %c0_0] : memref<128x128xbf16, #tpu.memory_space<vmem>>, vector<128x128xbf16>
    %c0_1 = arith.constant 0 : index
    %c0_2 = arith.constant 0 : index
    %1 = vector.load %arg1[%c0_1, %c0_2] : memref<8x128xf32, #tpu.memory_space<vmem>>, vector<8x128xf32>
    %c0_3 = arith.constant 0 : index
    %c0_4 = arith.constant 0 : index
    %2 = vector.load %arg3[%c0_3, %c0_4] : memref<1x128xf32, #tpu.memory_space<vmem>>, vector<1x128xf32>
    %3 = vector.shape_cast %2 : vector<1x128xf32> to vector<1x128xf32>
    %4 = vector.broadcast %3 : vector<1x128xf32> to vector<8x128xf32>
    %5 = arith.truncf %1 : vector<8x128xf32> to vector<8x128xbf16>
    %cst = arith.constant dense<0.000000e+00> : vector<8x128xf32>
    %6 = tpu.matmul %5, %0, %cst {dimension_numbers = #tpu.dot_dimension_numbers<[1], [0], [0], [1], [0, 0, 1, 1], [], []>} : vector<8x128xbf16>, vector<128x128xbf16>, vector<8x128xf32> -> vector<8x128xf32>
    %7 = arith.addf %6, %4 : vector<8x128xf32>
    %cst_5 = arith.constant 1.000000e-03 : f32
    %8 = vector.broadcast %cst_5 : f32 to vector<8x128xf32>
    %9 = arith.mulf %8, %7 : vector<8x128xf32>
    %cst_6 = arith.constant 0.000000e+00 : f32
    %10 = vector.broadcast %cst_6 : f32 to vector<8x128xf32>
    %11 = arith.maximumf %7, %10 : vector<8x128xf32>
    %12 = math.absf %7 : vector<8x128xf32>
    %cst_7 = arith.constant 0.000000e+00 : f32
    %13 = vector.broadcast %cst_7 : f32 to vector<8x128xf32>
    %14 = arith.subf %13, %12 : vector<8x128xf32>
    %15 = math.exp %14 : vector<8x128xf32>
    %16 = math.log1p %15 : vector<8x128xf32>
    %17 = arith.addf %11, %16 : vector<8x128xf32>
    %cst_8 = arith.constant 9.990000e-01 : f32
    %18 = vector.broadcast %cst_8 : f32 to vector<8x128xf32>
    %19 = arith.mulf %18, %17 : vector<8x128xf32>
    %20 = arith.addf %9, %19 : vector<8x128xf32>
    %cst_9 = arith.constant 1.000000e+00 : f32
    %21 = vector.broadcast %cst_9 : f32 to vector<8x128xf32>
    %22 = arith.mulf %21, %20 : vector<8x128xf32>
    %23 = arith.addf %1, %22 : vector<8x128xf32>
    %c0_10 = arith.constant 0 : index
    %c0_11 = arith.constant 0 : index
    %24 = vector.load %arg4[%c0_10, %c0_11] : memref<8x128xf32, #tpu.memory_space<vmem>>, vector<8x128xf32>
    tpu.vector_store %arg4[%c0_10, %c0_11], %23 {strides = array<i32>} : memref<8x128xf32, #tpu.memory_space<vmem>>, vector<8x128xf32>,
    return
  }
  func.func @transform_0(%arg0: i32) -> (i32, i32) {
    %c0_i32 = arith.constant 0 : i32
    %c0_i32_0 = arith.constant 0 : i32
    return %arg0, %c0_i32 : i32, i32
  }
  func.func @transform_1(%arg0: i32) -> (i32, i32) {
    %c0_i32 = arith.constant 0 : i32
    %c0_i32_0 = arith.constant 0 : i32
    %c0_i32_1 = arith.constant 0 : i32
    return %c0_i32, %c0_i32_0 : i32, i32
  }
  func.func @transform_2(%arg0: i32) -> (i32, i32) {
    %c0_i32 = arith.constant 0 : i32
    %c0_i32_0 = arith.constant 0 : i32
    %c0_i32_1 = arith.constant 0 : i32
    return %c0_i32, %c0_i32_0 : i32, i32
  }
  func.func @transform_3(%arg0: i32) -> (i32, i32) {
    %c0_i32 = arith.constant 0 : i32
    %c0_i32_0 = arith.constant 0 : i32
    return %arg0, %c0_i32 : i32, i32
  }
}

</mosaic_0001>

<bundles_post_ra>
// kernel: odeblock_forward.2
= control target key start
LH: loop header
LB: loop body
LE: loop exit
PB: predicated region body
PF: predicated region fallthrough
CT: control target
= control target key end

     0   :  { %s415_s0 = inlined_call_operand.hbm [shape: bf16[128,128], index: 0, kind: input, shape index: {}]   ;;  %s416_s1 = inlined_call_operand.vmem [shape: f32[1,128], index: 1, kind: input, shape index: {}]   ;;  %s417_s2 = inlined_call_operand.hbm [shape: f32[8,64], index: 2, kind: input, shape index: {}]   ;;  %s418_s3 = inlined_call_operand.<no memory space> [shape: f32[], index: 3, kind: input, shape index: {}]   ;;  %s419_s4 = inlined_call_operand.hbm [shape: f32[8,128], index: 4, kind: output, shape index: {}]  }
   0x1   :  { %v9_v0 = vstv %s418_s3 }
   0x2   :  { %10 = vsyncpa [#allocation8], 0 }
   0x3   :  { %11 = vsyncpa [#allocation11], 0 }
   0x4   :  { %12 = vsyncpa [#allocation9], 0  ;;  %s330_s17 = smov [#allocation7]   ;;  %s331_s19 = smov [#allocation10]  }
   0x5   :  { %s19_s18 = sshll.u32 %s330_s17, 4  ;;  %s28_s20 = sshll.u32 %s331_s19, 4  ;;  %s20_s18 = int_to_ptr.vmem [resolvable:$true] %s19_s18  ;;  %s365_s20 = int_to_ptr.vmem [resolvable:$true] %s28_s20 }
   0x6   :  { %s258_s23 = scalar_lea.hbm %s417_s2, 128 }
   0x7   :  { %p259_p0 = scmp.ne.s32.totalorder %s417_s2, %s258_s23  ;;  %p262_p1 = scmp.lt.u32.totalorder %s258_s23, %s417_s2 }
   0x9   :  { %p264_p2 = pnand %p262_p1, %p259_p0 }
   0xb   :  { %267 = shalt.err (!%p264_p2)
}
   0xc   :  { %s268_s28 = scalar_lea.vmem %s20_s18, 128  ;;  %p273_p4 = scmp.lt.s32.totalorder %s20_s18, %s20_s18 }
   0xd   :  { %p269_p3 = scmp.ne.s32.totalorder %s20_s18, %s268_s28  ;;  %p274_p5 = scmp.lt.s32.totalorder %s268_s28, %s268_s28 }
   0xf   :  { %p275_p6 = por %p274_p5, %p273_p4 }
  0x11   :  { %p276_p7 = pnand %p275_p6, %p269_p3 }
  0x13   :  { %279 = shalt.err (!%p276_p7)
}
  0x14   :  { %22 = dma.hbm_to_vmem [thread:$0]  %s417_s2, 128, %s20_s18, [#allocation8]  }
  0x15   :  { %s280_s7 = scalar_lea.hbm %s415_s0, 1024 }
  0x16   :  { %p281_p8 = scmp.ne.s32.totalorder %s415_s0, %s280_s7  ;;  %p284_p9 = scmp.lt.u32.totalorder %s280_s7, %s415_s0 }
  0x18   :  { %p286_p10 = pnand %p284_p9, %p281_p8 }
  0x1a   :  { %289 = shalt.err (!%p286_p10)
}
  0x1b   :  { %s290_s12 = scalar_lea.vmem %s365_s20, 1024  ;;  %p295_p12 = scmp.lt.s32.totalorder %s365_s20, %s365_s20 }
  0x1c   :  { %p291_p11 = scmp.ne.s32.totalorder %s365_s20, %s290_s12  ;;  %p296_p13 = scmp.lt.s32.totalorder %s290_s12, %s290_s12 }
  0x1e   :  { %p297_p0 = por %p296_p13, %p295_p12 }
  0x20   :  { %p298_p1 = pnand %p297_p0, %p291_p11 }
  0x22   :  { %301 = shalt.err (!%p298_p1)
}
  0x23   :  { %s332_s2 = smov 64   ;;  %s333_s13 = smov 4  }
  0x24   :  { %34 = dma.hbm_to_vmem [thread:$0]  %s415_s0, 1024, %s365_s20, [#allocation11], %s332_s2, %s332_s2, %s333_s13  }
  0x25   :  { %324 = dma.done.wait [#allocation8], 128  }
  0x26   :  { %325 = vsyncadd [#allocation8], 4294967168 }
  0x27   :  { %326 = dma.done.wait [#allocation11], 1024  }
  0x28   :  { %327 = vsyncadd [#allocation11], 4294966272  ;;  %v334_v1 = vmov 0.0   ;;  %vm335_vm0 = vmmov 0   ;;  %v246_v2 = vld [vmem:[#allocation10] sm:$0xff]   ;;  %v247_v3 = vld [vmem:[#allocation10 + $0x8] sm:$0xff]   ;;  %v44_v7 = vlaneseq }
  0x29   :  { %219 = vmatprep.subr.bf16.mxu0 %v334_v1  ;;  %235 = vmatprep.mubr.msk.bf16.mxu0 %vm335_vm0, %v334_v1  ;;  %v248_v4 = vld [vmem:[#allocation10 + $0x10] sm:$0xff]   ;;  %v249_v5 = vld [vmem:[#allocation10 + $0x18] sm:$0xff]   ;;  %v250_v6 = vld [vmem:[#allocation10 + $0x20] sm:$0xff]  }
  0x2a   :  { %220 = vmatpush3.bf16.msra.mxu0 %v246_v2  ;;  %v251_v8 = vld [vmem:[#allocation10 + $0x28] sm:$0xff]   ;;  %v45_v9 = vand.u32 127, %v44_v7  ;;  %v252_v10 = vld [vmem:[#allocation10 + $0x30] sm:$0xff]   ;;  %v43_v11 = vld [vmem:[#allocation7] sm:$0xff] }
  0x2b   :  { %221 = vmatprep.subr.bf16.mxu0 %v334_v1  ;;  %v253_v12 = vld [vmem:[#allocation10 + $0x38] sm:$0xff]  }
  0x2c   :  { %vm47_vm1 = vcmp.lt.s32.totalorder %v45_v9, 64  ;;  %v201_v15 = vld [vmem:[%s416_s1] ss:$0 sm:$0xff]  ;;  %s336_s1 = smov [#allocation12]  }
  0x2d   :  { %v48_v13 = vsel %vm47_vm1, %v43_v11, %v9_v0  ;;  %s191_s3 = sshll.u32 %s336_s1, 4  ;;  %s192_s3 = int_to_ptr.vmem [resolvable:$true] %s191_s3 }
  0x2e   :  { %222 = vmatpush3.bf16.msra.mxu0 %v247_v3  ;;  %v76_v14 = vpack.c.bf16 %v48_v13, %v48_v13  ;;  %s302_s19 = scalar_lea.vmem %s192_s3, 128  ;;  %p307_p3 = scmp.lt.s32.totalorder %s192_s3, %s192_s3 }
  0x2f   :  { %223 = vmatprep.subr.bf16.mxu0 %v334_v1  ;;  %p303_p2 = scmp.ne.s32.totalorder %s192_s3, %s302_s19  ;;  %p308_p4 = scmp.lt.s32.totalorder %s302_s19, %s302_s19 }
  0x31   :  { %p309_p5 = por %p308_p4, %p307_p3 }
  0x32   :  { %224 = vmatpush3.bf16.msra.mxu0 %v248_v4 }
  0x33   :  { %225 = vmatprep.subr.bf16.mxu0 %v334_v1  ;;  %p310_p6 = pnand %p309_p5, %p303_p2 }
  0x36   :  { %226 = vmatpush3.bf16.msra.mxu0 %v249_v5 }
  0x37   :  { %227 = vmatprep.subr.bf16.mxu0 %v334_v1 }
  0x3a   :  { %228 = vmatpush3.bf16.msra.mxu0 %v250_v6 }
  0x3b   :  { %229 = vmatprep.subr.bf16.mxu0 %v334_v1 }
  0x3e   :  { %230 = vmatpush3.bf16.msra.mxu0 %v251_v8 }
  0x3f   :  { %231 = vmatprep.subr.bf16.mxu0 %v334_v1 }
  0x42   :  { %232 = vmatpush3.bf16.msra.mxu0 %v252_v10 }
  0x43   :  { %233 = vmatprep.subr.bf16.mxu0 %v334_v1 }
  0x46   :  { %234 = vmatpush3.bf16.msra.mxu0 %v253_v12 }
  0x49   :  { %236 = vmatmul.mubr.bf16.vlgmr.msra.gmra.mrb[0].mxu0 %v76_v14 }
 0x11c   :  { %v159_v16 = vpop.f32.mrb[0].mxu0 }
 0x11d   :  { %v160_v17 = vadd.f32 %v201_v15, %v159_v16  ;;  %v237_v18 = vpop.f32.mrb[1].mxu0 }
 0x11e   :  { %v162_v19 = vpop.f32.mrb[2].mxu0 }
 0x11f   :  { %v167_v20 = vand.u32 2147483647, %v160_v17  ;;  %v238_v21 = vpop.f32.mrb[3].mxu0  ;;  %v166_v32 = vmax.f32 %v160_v17, 0.0  ;;  %v165_v35 = vmul.f32 0.001, %v160_v17 }
 0x121   :  { %v168_v22 = vsub.f32 0.0, %v167_v20 }
 0x123   :  { %v169_v23 = vmul.f32 1.442695, %v168_v22 }
 0x125   :  { %254 = vpow2.f32 %v169_v23 }
 0x12f   :  { %v255_v24 = vpop.eup %254 }
 0x130   :  { %v171_v25 = vadd.f32 1.0, %v255_v24  ;;  %v174_v26 = vmul.f32 -0.5, %v255_v24  ;;  %v177_v28 = vand.u32 2147483647, %v255_v24 }
 0x132   :  { %256 = vlog2.f32 %v171_v25  ;;  %v175_v27 = vadd.f32 1.0, %v174_v26  ;;  %vm178_vm2 = vcmp.lt.f32.partialorder %v177_v28, 0.0004427343 }
 0x134   :  { %v176_v31 = vmul.f32 %v255_v24, %v175_v27 }
 0x13c   :  { %v257_v29 = vpop.eup %256 }
 0x13d   :  { %v173_v30 = vmul.f32 0.6931472, %v257_v29 }
 0x13f   :  { %v179_v33 = vsel %vm178_vm2, %v176_v31, %v173_v30 }
 0x140   :  { %v180_v34 = vadd.f32 %v179_v33, %v166_v32 }
 0x142   :  { %v181_v36 = vmul.f32 0.999, %v180_v34 }
 0x144   :  { %v182_v37 = vadd.f32 %v181_v36, %v165_v35 }
 0x146   :  { %v183_v38 = vadd.f32 %v182_v37, %v48_v13 }
 0x148   :  { %184 = vst [vmem:[#allocation12] sm:$0xff] %v183_v38 }
 0x149   :  { %313 = shalt.err (!%p310_p6)
}
 0x14a   :  { %s314_s22 = scalar_lea.hbm %s419_s4, 128 }
 0x14b   :  { %p315_p7 = scmp.ne.s32.totalorder %s419_s4, %s314_s22  ;;  %p318_p8 = scmp.lt.u32.totalorder %s314_s22, %s419_s4 }
 0x14d   :  { %p320_p9 = pnand %p318_p8, %p315_p7 }
 0x14f   :  { %323 = shalt.err (!%p320_p9)
}
 0x150   :  { %194 = dma.vmem_to_hbm [thread:$0]  %s192_s3, 128, %s419_s4, [#allocation9]  }
 0x151   :  { %328 = dma.done.wait [#allocation9], 128  }
 0x152   :  { %329 = vsyncadd [#allocation9], 4294967168 }
 0x153   :  { %198 = vsyncpa [#allocation8], 1 }
 0x154   :  { %199 = vsyncpa [#allocation11], 1 }
 0x155   :  { %200 = vsyncpa [#allocation9], 1 }

</bundles_post_ra>
